<compile_context>
chip_gen: v6e
topology: v6e:2x2x1
jax: 0.10.0
libtpu: 0.0.40
codegen_flags: <defaults>
</compile_context>

<pallas_src>
import jax
import jax.numpy as jnp
from jax.experimental import pallas as pl
from jax.experimental.pallas import tpu as pltpu


def _round_up(n: int, m: int) -> int:
    return ((n + m - 1) // m) * m


def modified_net_kernel(p_ref, x0_ref, x1_ref, o_ref):
    """VPU/EUP-only compute; the 17 parameters are scalars in SMEM.

    p_ref layout (17 x f32):
      [0:8]   layer1.weight row-major (4, 2)
      [8:12]  layer1.bias   (4,)
      [12:16] layer2.weight (1, 4)
      [16]    layer2.bias   (1,)
    """
    x0 = x0_ref[...]  # (TILE_R, C) f32, input feature 0 (batch packed on sublanes+lanes)
    x1 = x1_ref[...]  # (TILE_R, C) f32, input feature 1

    z = None
    for j in range(4):  # unrolled at trace time; all broadcast FMAs on the VPU
        hj = x0 * p_ref[2 * j] + x1 * p_ref[2 * j + 1] + p_ref[8 + j]   # Linear(2,4), col j
        hj = jnp.maximum(hj, -1.0)                                       # ShiftedReLU
        term = hj * p_ref[12 + j]                                        # Linear(4,1) accumulate
        z = term if z is None else z + term
    z = z + p_ref[16]

    # ScaledSigmoid: 2*sigmoid(z) - 1 == tanh(z/2)  (single EUP op)
    o_ref[...] = jnp.tanh(0.5 * z).astype(o_ref.dtype)


def modified_net_forward(x, w1, b1, w2, b2, *, lanes=512, tile_rows=512):
    """x: (B, 2). w1: (4, 2), b1: (4,), w2: (1, 4), b2: (1,) — PyTorch nn.Linear layout.

    Returns (B, 1) float32, matching ModifiedNet.forward.
    """
    B = x.shape[0]

    # Pack the 17 parameters into one SMEM-resident f32 vector.
    params = jnp.concatenate([
        jnp.asarray(w1, jnp.float32).reshape(-1),   # 8
        jnp.asarray(b1, jnp.float32).reshape(-1),   # 4
        jnp.asarray(w2, jnp.float32).reshape(-1),   # 4
        jnp.asarray(b2, jnp.float32).reshape(-1),   # 1
    ])                                              # (17,)

    # Dense 2-D batch layout: B -> (R_pad, C) with C a multiple of 128 and TILE_R a multiple of 8.
    C = lanes if B >= lanes else 128
    r_needed = pl.cdiv(B, C)
    TILE_R = min(tile_rows, _round_up(r_needed, 8))
    R_pad = _round_up(r_needed, TILE_R)
    B_pad = R_pad * C

    xf = jnp.asarray(x, jnp.float32)
    if B_pad != B:
        xf = jnp.pad(xf, ((0, B_pad - B), (0, 0)))
    # Split the two input features into separate dense slabs (layout plumbing outside the kernel).
    x0 = xf[:, 0].reshape(R_pad, C)
    x1 = xf[:, 1].reshape(R_pad, C)

    grid = (R_pad // TILE_R,)
    out = pl.pallas_call(
        modified_net_kernel,
        out_shape=jax.ShapeDtypeStruct((R_pad, C), jnp.float32),
        grid=grid,
        in_specs=[
            pl.BlockSpec(memory_space=pltpu.MemorySpace.SMEM),      # params: resident, no per-step DMA
            pl.BlockSpec((TILE_R, C), lambda i: (i, 0)),            # x0 tile
            pl.BlockSpec((TILE_R, C), lambda i: (i, 0)),            # x1 tile
        ],
        out_specs=pl.BlockSpec((TILE_R, C), lambda i: (i, 0)),
        compiler_params=pltpu.CompilerParams(
            dimension_semantics=("parallel",),                      # 2x on v7x megacore
        ),
    )(params, x0, x1)

    return out.reshape(-1)[:B].reshape(B, 1)


def _reference(x, w1, b1, w2, b2):
    h = x @ w1.T + b1
    h = jnp.maximum(h, -1.0)
    z = h @ w2.T + b2
    return 2.0 * jax.nn.sigmoid(z) - 1.0


if __name__ == "__main__":
    key = jax.random.PRNGKey(0)
    k_x, k_w1, k_b1, k_w2, k_b2 = jax.random.split(key, 5)

    B = 8
    x = jax.random.normal(k_x, (B, 2), dtype=jnp.float32)

    # Deterministic parameters (shapes from ModifiedNet.__init__)
    w1 = jax.random.normal(k_w1, (4, 2), dtype=jnp.float32) * 0.5   # layer1.weight
    b1 = jax.random.normal(k_b1, (4,), dtype=jnp.float32) * 0.1     # layer1.bias
    w2 = jax.random.normal(k_w2, (1, 4), dtype=jnp.float32) * 0.5   # layer2.weight
    b2 = jax.random.normal(k_b2, (1,), dtype=jnp.float32) * 0.1     # layer2.bias

    out = modified_net_forward(x, w1, b1, w2, b2)
    out = jax.block_until_ready(out)

    ref = _reference(x, w1, b1, w2, b2)
    assert out.shape == (B, 1), out.shape
    assert jnp.allclose(out, ref, atol=1e-5, rtol=1e-5), (out, ref)

    print("KERNEL_OK")
</pallas_src>

<mosaic_0001>
module attributes {stable_mosaic.version = 11 : i64} {
  func.func @modified_net_kernel(%arg0: i32, %arg1: memref<17xf32, #tpu.memory_space<smem>>, %arg2: memref<8x128xf32, #tpu.memory_space<vmem>>, %arg3: memref<8x128xf32, #tpu.memory_space<vmem>>, %arg4: memref<8x128xf32, #tpu.memory_space<vmem>>) attributes {dimension_semantics = [#tpu.dimension_semantics<parallel>], iteration_bounds = array<i64: 1>, scalar_prefetch = 0 : i64, scratch_operands = 0 : i64, tpu.core_type = #tpu.core_type<tc>, window_params = [{transform_indices = @transform_0, window_bounds = array<i64: 17>}, {transform_indices = @transform_1, window_bounds = array<i64: 8, 128>}, {transform_indices = @transform_2, window_bounds = array<i64: 8, 128>}, {transform_indices = @transform_3, window_bounds = array<i64: 8, 128>}]} {
    %c0 = arith.constant 0 : index
    %c0_0 = arith.constant 0 : index
    %0 = vector.load %arg2[%c0, %c0_0] : memref<8x128xf32, #tpu.memory_space<vmem>>, vector<8x128xf32>
    %c0_1 = arith.constant 0 : index
    %c0_2 = arith.constant 0 : index
    %1 = vector.load %arg3[%c0_1, %c0_2] : memref<8x128xf32, #tpu.memory_space<vmem>>, vector<8x128xf32>
    %c0_3 = arith.constant 0 : index
    %2 = memref.load %arg1[%c0_3] : memref<17xf32, #tpu.memory_space<smem>>
    %3 = vector.broadcast %2 : f32 to vector<8x128xf32>
    %4 = arith.mulf %0, %3 : vector<8x128xf32>
    %c1 = arith.constant 1 : index
    %5 = memref.load %arg1[%c1] : memref<17xf32, #tpu.memory_space<smem>>
    %6 = vector.broadcast %5 : f32 to vector<8x128xf32>
    %7 = arith.mulf %1, %6 : vector<8x128xf32>
    %8 = arith.addf %4, %7 : vector<8x128xf32>
    %c8 = arith.constant 8 : index
    %9 = memref.load %arg1[%c8] : memref<17xf32, #tpu.memory_space<smem>>
    %10 = vector.broadcast %9 : f32 to vector<8x128xf32>
    %11 = arith.addf %8, %10 : vector<8x128xf32>
    %cst = arith.constant -1.000000e+00 : f32
    %12 = vector.broadcast %cst : f32 to vector<8x128xf32>
    %13 = arith.maximumf %11, %12 : vector<8x128xf32>
    %c12 = arith.constant 12 : index
    %14 = memref.load %arg1[%c12] : memref<17xf32, #tpu.memory_space<smem>>
    %15 = vector.broadcast %14 : f32 to vector<8x128xf32>
    %16 = arith.mulf %13, %15 : vector<8x128xf32>
    %c2 = arith.constant 2 : index
    %17 = memref.load %arg1[%c2] : memref<17xf32, #tpu.memory_space<smem>>
    %18 = vector.broadcast %17 : f32 to vector<8x128xf32>
    %19 = arith.mulf %0, %18 : vector<8x128xf32>
    %c3 = arith.constant 3 : index
    %20 = memref.load %arg1[%c3] : memref<17xf32, #tpu.memory_space<smem>>
    %21 = vector.broadcast %20 : f32 to vector<8x128xf32>
    %22 = arith.mulf %1, %21 : vector<8x128xf32>
    %23 = arith.addf %19, %22 : vector<8x128xf32>
    %c9 = arith.constant 9 : index
    %24 = memref.load %arg1[%c9] : memref<17xf32, #tpu.memory_space<smem>>
    %25 = vector.broadcast %24 : f32 to vector<8x128xf32>
    %26 = arith.addf %23, %25 : vector<8x128xf32>
    %cst_4 = arith.constant -1.000000e+00 : f32
    %27 = vector.broadcast %cst_4 : f32 to vector<8x128xf32>
    %28 = arith.maximumf %26, %27 : vector<8x128xf32>
    %c13 = arith.constant 13 : index
    %29 = memref.load %arg1[%c13] : memref<17xf32, #tpu.memory_space<smem>>
    %30 = vector.broadcast %29 : f32 to vector<8x128xf32>
    %31 = arith.mulf %28, %30 : vector<8x128xf32>
    %32 = arith.addf %16, %31 : vector<8x128xf32>
    %c4 = arith.constant 4 : index
    %33 = memref.load %arg1[%c4] : memref<17xf32, #tpu.memory_space<smem>>
    %34 = vector.broadcast %33 : f32 to vector<8x128xf32>
    %35 = arith.mulf %0, %34 : vector<8x128xf32>
    %c5 = arith.constant 5 : index
    %36 = memref.load %arg1[%c5] : memref<17xf32, #tpu.memory_space<smem>>
    %37 = vector.broadcast %36 : f32 to vector<8x128xf32>
    %38 = arith.mulf %1, %37 : vector<8x128xf32>
    %39 = arith.addf %35, %38 : vector<8x128xf32>
    %c10 = arith.constant 10 : index
    %40 = memref.load %arg1[%c10] : memref<17xf32, #tpu.memory_space<smem>>
    %41 = vector.broadcast %40 : f32 to vector<8x128xf32>
    %42 = arith.addf %39, %41 : vector<8x128xf32>
    %cst_5 = arith.constant -1.000000e+00 : f32
    %43 = vector.broadcast %cst_5 : f32 to vector<8x128xf32>
    %44 = arith.maximumf %42, %43 : vector<8x128xf32>
    %c14 = arith.constant 14 : index
    %45 = memref.load %arg1[%c14] : memref<17xf32, #tpu.memory_space<smem>>
    %46 = vector.broadcast %45 : f32 to vector<8x128xf32>
    %47 = arith.mulf %44, %46 : vector<8x128xf32>
    %48 = arith.addf %32, %47 : vector<8x128xf32>
    %c6 = arith.constant 6 : index
    %49 = memref.load %arg1[%c6] : memref<17xf32, #tpu.memory_space<smem>>
    %50 = vector.broadcast %49 : f32 to vector<8x128xf32>
    %51 = arith.mulf %0, %50 : vector<8x128xf32>
    %c7 = arith.constant 7 : index
    %52 = memref.load %arg1[%c7] : memref<17xf32, #tpu.memory_space<smem>>
    %53 = vector.broadcast %52 : f32 to vector<8x128xf32>
    %54 = arith.mulf %1, %53 : vector<8x128xf32>
    %55 = arith.addf %51, %54 : vector<8x128xf32>
    %c11 = arith.constant 11 : index
    %56 = memref.load %arg1[%c11] : memref<17xf32, #tpu.memory_space<smem>>
    %57 = vector.broadcast %56 : f32 to vector<8x128xf32>
    %58 = arith.addf %55, %57 : vector<8x128xf32>
    %cst_6 = arith.constant -1.000000e+00 : f32
    %59 = vector.broadcast %cst_6 : f32 to vector<8x128xf32>
    %60 = arith.maximumf %58, %59 : vector<8x128xf32>
    %c15 = arith.constant 15 : index
    %61 = memref.load %arg1[%c15] : memref<17xf32, #tpu.memory_space<smem>>
    %62 = vector.broadcast %61 : f32 to vector<8x128xf32>
    %63 = arith.mulf %60, %62 : vector<8x128xf32>
    %64 = arith.addf %48, %63 : vector<8x128xf32>
    %c16 = arith.constant 16 : index
    %65 = memref.load %arg1[%c16] : memref<17xf32, #tpu.memory_space<smem>>
    %66 = vector.broadcast %65 : f32 to vector<8x128xf32>
    %67 = arith.addf %64, %66 : vector<8x128xf32>
    %cst_7 = arith.constant 5.000000e-01 : f32
    %68 = vector.broadcast %cst_7 : f32 to vector<8x128xf32>
    %69 = arith.mulf %68, %67 : vector<8x128xf32>
    %70 = math.tanh %69 : vector<8x128xf32>
    %c0_8 = arith.constant 0 : index
    %c0_9 = arith.constant 0 : index
    %71 = vector.load %arg4[%c0_8, %c0_9] : memref<8x128xf32, #tpu.memory_space<vmem>>, vector<8x128xf32>
    tpu.vector_store %arg4[%c0_8, %c0_9], %70 {strides = array<i32>} : memref<8x128xf32, #tpu.memory_space<vmem>>, vector<8x128xf32>,
    return
  }
  func.func @transform_0(%arg0: i32) -> i32 {
    %c0_i32 = arith.constant 0 : i32
    %c0_i32_0 = arith.constant 0 : i32
    return %c0_i32 : i32
  }
  func.func @transform_1(%arg0: i32) -> (i32, i32) {
    %c0_i32 = arith.constant 0 : i32
    %c0_i32_0 = arith.constant 0 : i32
    return %arg0, %c0_i32 : i32, i32
  }
  func.func @transform_2(%arg0: i32) -> (i32, i32) {
    %c0_i32 = arith.constant 0 : i32
    %c0_i32_0 = arith.constant 0 : i32
    return %arg0, %c0_i32 : i32, i32
  }
  func.func @transform_3(%arg0: i32) -> (i32, i32) {
    %c0_i32 = arith.constant 0 : i32
    %c0_i32_0 = arith.constant 0 : i32
    return %arg0, %c0_i32 : i32, i32
  }
}

</mosaic_0001>

<bundles_post_ra>
// kernel: tpu_custom_call.1
= control target key start
LH: loop header
LB: loop body
LE: loop exit
PB: predicated region body
PF: predicated region fallthrough
CT: control target
= control target key end

     0   :  { %8 = vsyncpa [#allocation5], 0  ;;  %s277_s0 = inlined_call_operand.hbm [shape: f32[17], index: 0, kind: input, shape index: {}]   ;;  %s278_s1 = inlined_call_operand.hbm [shape: f32[8,128], index: 1, kind: input, shape index: {}]   ;;  %s279_s2 = inlined_call_operand.hbm [shape: f32[8,128], index: 2, kind: input, shape index: {}]   ;;  %s280_s3 = inlined_call_operand.hbm [shape: f32[8,128], index: 3, kind: output, shape index: {}]  }
   0x1   :  { %9 = vsyncpa [#allocation3], 0 }
   0x2   :  { %10 = vsyncpa [#allocation8], 0 }
   0x3   :  { %11 = vsyncpa [#allocation4], 0  ;;  %s232_s12 = smov [#allocation2]   ;;  %s233_s15 = smov [#allocation6]  }
   0x4   :  { %19 = dma.hbm_to_smem %s277_s0, 16, %s232_s12, [#allocation5]  }
   0x5   :  { %s26_s16 = sshll.u32 %s233_s15, 4  ;;  %s234_s17 = smov [#allocation7]   ;;  %s27_s16 = int_to_ptr.vmem [resolvable:$true] %s26_s16 }
   0x6   :  { %s36_s18 = sshll.u32 %s234_s17, 4  ;;  %s172_s19 = scalar_lea.vmem %s27_s16, 128  ;;  %s37_s18 = int_to_ptr.vmem [resolvable:$true] %s36_s18 }
   0x7   :  { %p173_p0 = scmp.ne.s32.totalorder %s27_s16, %s172_s19  ;;  %p177_p1 = scmp.lt.s32.totalorder %s27_s16, %s27_s16 }
   0x8   :  { %p178_p2 = scmp.lt.s32.totalorder %s172_s19, %s172_s19 }
   0xa   :  { %p179_p3 = por %p178_p2, %p177_p1 }
   0xc   :  { %p180_p4 = pnand %p179_p3, %p173_p0 }
   0xe   :  { %183 = shalt.err (!%p180_p4)
}
   0xf   :  { %29 = dma.hbm_to_vmem [thread:$0]  %s278_s1, 128, %s27_s16, [#allocation3]  }
  0x10   :  { %s192_s22 = scalar_lea.vmem %s37_s18, 128  ;;  %p197_p6 = scmp.lt.s32.totalorder %s37_s18, %s37_s18 }
  0x11   :  { %p193_p5 = scmp.ne.s32.totalorder %s37_s18, %s192_s22  ;;  %p198_p7 = scmp.lt.s32.totalorder %s192_s22, %s192_s22 }
  0x13   :  { %p199_p8 = por %p198_p7, %p197_p6 }
  0x15   :  { %p200_p9 = pnand %p199_p8, %p193_p5 }
  0x17   :  { %203 = shalt.err (!%p200_p9)
}
  0x18   :  { %39 = dma.hbm_to_vmem [thread:$0]  %s279_s2, 128, %s37_s18, [#allocation8]  }
  0x19   :  { %224 = dma.done.wait [#allocation5], 16  }
  0x1a   :  { %225 = vsyncadd [#allocation5], 4294967280 }
  0x1b   :  { %226 = dma.done.wait [#allocation3], 128  }
  0x1c   :  { %227 = vsyncadd [#allocation3], 4294967168 }
  0x1d   :  { %228 = dma.done.wait [#allocation8], 128  }
  0x1e   :  { %229 = vsyncadd [#allocation8], 4294967168 }
  0x1f   :  { %49 = sfence }
  0x20   :  { %s52_s1 = sld [smem:[#allocation2]]  ;;  %v50_v0 = vld [vmem:[#allocation6] sm:$0xff]  ;;  %v51_v1 = vld [vmem:[#allocation7] sm:$0xff]  ;;  %s235_s12 = smov [#allocation9]  }
  0x21   :  { %s134_s24 = sld [smem:[#allocation2 + $0x1]]  ;;  %s123_s13 = sshll.u32 %s235_s12, 4  ;;  %s124_s13 = int_to_ptr.vmem [resolvable:$true] %s123_s13 }
  0x22   :  { %s135_s25 = sld [smem:[#allocation2 + $0x8]]  ;;  %s204_s14 = scalar_lea.vmem %s124_s13, 128 }
  0x23   :  { %s265_s26 = sld [smem:[#allocation2 + $0xc]]  ;;  %p205_p10 = scmp.ne.s32.totalorder %s124_s13, %s204_s14 }
  0x24   :  { %s137_s27 = sld [smem:[#allocation2 + $0x2]]  ;;  %p209_p11 = scmp.lt.s32.totalorder %s124_s13, %s124_s13 }
  0x25   :  { %s138_s28 = sld [smem:[#allocation2 + $0x3]]  ;;  %p210_p12 = scmp.lt.s32.totalorder %s204_s14, %s204_s14 }
  0x26   :  { %v53_v2 = vstv %s52_s1  ;;  %s139_s29 = sld [smem:[#allocation2 + $0x9]] }
  0x27   :  { %v54_v3 = vmul.f32 %v53_v2, %v50_v0  ;;  %v56_v4 = vstv %s134_s24  ;;  %s267_s2 = sld [smem:[#allocation2 + $0xd]]  ;;  %p211_p13 = por %p210_p12, %p209_p11 }
  0x28   :  { %v57_v5 = vmul.f32 %v56_v4, %v51_v1  ;;  %s141_s30 = sld [smem:[#allocation2 + $0x4]]  ;;  %v60_v6 = vstv %s135_s25 }
  0x29   :  { %s142_s4 = sld [smem:[#allocation2 + $0x5]]  ;;  %v64_v17 = vstv %s265_s26  ;;  %p212_p0 = pnand %p211_p13, %p205_p10 }
  0x2a   :  { %v58_v7 = vadd.f32 %v57_v5, %v54_v3  ;;  %v67_v8 = vstv %s137_s27  ;;  %s143_s5 = sld [smem:[#allocation2 + $0xa]] }
  0x2b   :  { %v68_v9 = vmul.f32 %v67_v8, %v50_v0  ;;  %v70_v10 = vstv %s138_s28  ;;  %s269_s6 = sld [smem:[#allocation2 + $0xe]] }
  0x2c   :  { %v61_v11 = vadd.f32 %v60_v6, %v58_v7  ;;  %v71_v12 = vmul.f32 %v70_v10, %v51_v1  ;;  %s145_s7 = sld [smem:[#allocation2 + $0x6]]  ;;  %v74_v13 = vstv %s139_s29 }
  0x2d   :  { %s146_s8 = sld [smem:[#allocation2 + $0x7]]  ;;  %v78_v22 = vstv %s267_s2 }
  0x2e   :  { %v62_v14 = vmax.f32 %v61_v11, -1.0  ;;  %v72_v15 = vadd.f32 %v71_v12, %v68_v9  ;;  %v82_v16 = vstv %s141_s30  ;;  %s147_s9 = sld [smem:[#allocation2 + $0xb]] }
  0x2f   :  { %v83_v18 = vmul.f32 %v82_v16, %v50_v0  ;;  %v85_v19 = vstv %s142_s4  ;;  %s148_s10 = sld [smem:[#allocation2 + $0xf]] }
  0x30   :  { %v75_v20 = vadd.f32 %v74_v13, %v72_v15  ;;  %v86_v21 = vmul.f32 %v85_v19, %v51_v1  ;;  %v89_v23 = vstv %s143_s5  ;;  %v65_v24 = vmul.f32 %v64_v17, %v62_v14  ;;  %s149_s11 = sld [smem:[#allocation2 + $0x10]] }
  0x31   :  { %v93_v33 = vstv %s269_s6 }
  0x32   :  { %v76_v25 = vmax.f32 %v75_v20, -1.0  ;;  %v87_v26 = vadd.f32 %v86_v21, %v83_v18  ;;  %v97_v27 = vstv %s145_s7 }
  0x33   :  { %v98_v28 = vmul.f32 %v97_v27, %v50_v0  ;;  %v100_v29 = vstv %s146_s8 }
  0x34   :  { %v79_v30 = vmul.f32 %v78_v22, %v76_v25  ;;  %v90_v31 = vadd.f32 %v89_v23, %v87_v26  ;;  %v101_v32 = vmul.f32 %v100_v29, %v51_v1  ;;  %v104_v34 = vstv %s147_s9 }
  0x35   :  { %v108_v40 = vstv %s148_s10 }
  0x36   :  { %v80_v35 = vadd.f32 %v79_v30, %v65_v24  ;;  %v91_v36 = vmax.f32 %v90_v31, -1.0  ;;  %v102_v37 = vadd.f32 %v101_v32, %v98_v28  ;;  %v112_v44 = vstv %s149_s11 }
  0x38   :  { %v94_v38 = vmul.f32 %v93_v33, %v91_v36  ;;  %v105_v39 = vadd.f32 %v104_v34, %v102_v37 }
  0x3a   :  { %v95_v41 = vadd.f32 %v94_v38, %v80_v35  ;;  %v106_v42 = vmax.f32 %v105_v39, -1.0 }
  0x3c   :  { %v109_v43 = vmul.f32 %v108_v40, %v106_v42 }
  0x3e   :  { %v110_v45 = vadd.f32 %v109_v43, %v95_v41 }
  0x40   :  { %v113_v46 = vadd.f32 %v112_v44, %v110_v45 }
  0x42   :  { %v114_v47 = vmul.f32 0.5, %v113_v46 }
  0x44   :  { %154 = vtanh.f32 %v114_v47 }
  0x51   :  { %v155_v48 = vpop.eup %154 }
  0x52   :  { %116 = vst [vmem:[#allocation9] sm:$0xff] %v155_v48 }
  0x53   :  { %215 = shalt.err (!%p212_p0)
}
  0x54   :  { %126 = dma.vmem_to_hbm [thread:$0]  %s124_s13, 128, %s280_s3, [#allocation4]  }
  0x55   :  { %230 = dma.done.wait [#allocation4], 128  }
  0x56   :  { %231 = vsyncadd [#allocation4], 4294967168 }
  0x57   :  { %130 = vsyncpa [#allocation3], 1 }
  0x58   :  { %131 = vsyncpa [#allocation8], 1 }
  0x59   :  { %132 = vsyncpa [#allocation4], 1 }
  0x5a   :  { %133 = vsyncpa [#allocation5], 1 }

</bundles_post_ra>
